<compile_context>
chip_gen: v5e
topology: v5e:2x2
jax: 0.10.0
libtpu: 0.0.40
codegen_flags: <defaults>
</compile_context>

<pallas_src>
import numpy as np
import jax
import jax.numpy as jnp
from jax.experimental import pallas as pl
from jax.experimental.pallas import tpu as pltpu


def _pad8(c):
    """Sublane-padded channel count (f32 packs 8 rows per vreg)."""
    return max(8, ((c + 7) // 8) * 8)


def _vmem_capacity_bytes():
    """Physical VMEM of the current generation; conservative fallback."""
    try:
        return int(pltpu.get_tpu_info().vmem_capacity_bytes)
    except Exception:
        return 64 << 20  # v7x-sized fallback works everywhere


def make_kernel(num_layers, batch_block, compute_dtype):
    """Kernel args: x_ref, (w1, b1, ..., wL, bL), o_ref."""

    def kernel(x_ref, *rest):
        o_ref = rest[-1]
        prm = rest[:-1]
        # Load the (tiny) weights / biases once per grid step and reuse them
        # for every batch element in this block.
        ws = [prm[2 * i][...] for i in range(num_layers)]       # (C_out, C_in)
        bs = [prm[2 * i + 1][...] for i in range(num_layers)]   # (C_out, 1)

        for n in range(batch_block):                  # static unroll over batch
            h = x_ref[n]                              # (C_in, T), lane-dense
            for i in range(num_layers):
                if compute_dtype is not None:
                    h = h.astype(compute_dtype)
                # 1x1 conv == channel matmul on the MXU; lanes stay = spatial.
                h = jnp.dot(ws[i], h, preferred_element_type=jnp.float32) + bs[i]
                if i < num_layers - 1:
                    h = jnp.maximum(h, 0.0)           # ReLU between layers only
            o_ref[n] = h.astype(o_ref.dtype)          # single dense block store

    return kernel


def for_igarss_forward(x_nchw, params, *, compute_dtype=None, out_dtype=None):
    """params: list of (w, b) per conv layer, w: (C_out, C_in), b: (C_out,).

    compute_dtype: optionally jnp.bfloat16 for the matmul inputs (f32 accum).
    out_dtype:     optionally jnp.bfloat16 output to cut HBM write bytes.
    Defaults keep full f32 numerics (matches the f32 reference to 1e-4).
    """
    N, C, H, W = x_nchw.shape
    HW = H * W
    L = len(params)
    out_channels = [w.shape[0] for (w, _) in params]
    C_out = out_channels[-1]
    out_dtype = out_dtype or x_nchw.dtype

    x = x_nchw.reshape(N, C, HW)  # NCHW -> (N, C, H*W): contiguous, lane-dense

    # ---- generation-aware VMEM budgeting ------------------------------------
    vmem_cap = _vmem_capacity_bytes()            # 128 MiB v5e/v6e, 64 MiB v7x
    tile_budget = vmem_cap // 2                  # headroom for compiler scratch
    vmem_limit = (vmem_cap * 3) // 4             # explicit scoped-VMEM limit

    # Bytes per spatial column (double-buffered in/out blocks + all padded
    # layer intermediates), f32.
    bytes_per_col = 4 * (2 * _pad8(C) + 2 * _pad8(C_out)
                         + sum(_pad8(c) for c in out_channels))

    whole_bytes = N * HW * bytes_per_col
    single_step = whole_bytes <= min(tile_budget, 8 << 20)

    if single_step:
        # Tiny problem: one grid step, whole array as one block, weights
        # loaded exactly once.
        BN, T = N, HW
        grid = (1, 1)
    else:
        BN = 1
        T = min(tile_budget // bytes_per_col, 32768, HW)
        if HW > 128:
            T = max(128, (T // 128) * 128)       # lane-aligned tile
        else:
            T = HW                               # tiny spatial: full extent
        # v7x has two TensorCores sharing the parallel grid: if there is only
        # one batch element, split the spatial axis so both cores get work.
        if N == 1 and T >= HW and HW >= 256:
            T = max(128, (((HW + 1) // 2) // 128) * 128)
        grid = (N, pl.cdiv(HW, T))               # ragged last tile is masked

    # ---- flatten params + specs ---------------------------------------------
    w_dtype = jnp.float32 if compute_dtype is None else compute_dtype
    flat = []
    in_specs = [pl.BlockSpec((BN, C, T), lambda n, s: (n, 0, s))]
    c_in = C
    for (w, b) in params:
        c_out = w.shape[0]
        flat += [w.astype(w_dtype), b.reshape(c_out, 1).astype(jnp.float32)]
        in_specs += [
            pl.BlockSpec((c_out, c_in), lambda n, s: (0, 0)),
            pl.BlockSpec((c_out, 1), lambda n, s: (0, 0)),
        ]
        c_in = c_out

    out = pl.pallas_call(
        make_kernel(L, BN, compute_dtype),
        out_shape=jax.ShapeDtypeStruct((N, C_out, HW), out_dtype),
        grid=grid,
        in_specs=in_specs,
        out_specs=pl.BlockSpec((BN, C_out, T), lambda n, s: (n, 0, s)),
        compiler_params=pltpu.CompilerParams(
            dimension_semantics=("parallel", "parallel"),
            vmem_limit_bytes=int(vmem_limit)),
    )(x, *flat)

    return out.reshape(N, C_out, H, W)           # back to NCHW


def ref_forward(x_nchw, params):
    """Pure-JAX reference mirroring the PyTorch nn.Sequential of 1x1 convs."""
    h = x_nchw
    n_layers = len(params)
    for i, (w, b) in enumerate(params):
        h = jnp.einsum('oc,nchw->nohw', w, h) + b.reshape(1, -1, 1, 1)
        if i < n_layers - 1:
            h = jnp.maximum(h, 0.0)
    return h


if __name__ == "__main__":
    # for_igarss(input_channel=4, endmember_num=16):
    #   res = (16 - 4) // 4 = 3  ->  channels 4 -> 7 -> 10 -> 13 -> 16
    N, H, W = 2, 16, 16
    input_channel, endmember_num = 4, 16
    res = (endmember_num - input_channel) // 4
    chans = [input_channel,
             input_channel + res,
             input_channel + 2 * res,
             input_channel + 3 * res,
             endmember_num]

    key = jax.random.PRNGKey(0)
    key, kx = jax.random.split(key)
    x = jax.random.normal(kx, (N, input_channel, H, W), jnp.float32)

    params = []
    for c_in, c_out in zip(chans[:-1], chans[1:]):
        key, kw, kb = jax.random.split(key, 3)
        w = jax.random.normal(kw, (c_out, c_in), jnp.float32) / np.sqrt(c_in)
        b = jax.random.normal(kb, (c_out,), jnp.float32) * 0.1
        params.append((w, b))

    out = jax.block_until_ready(for_igarss_forward(x, params))
    ref = jax.block_until_ready(ref_forward(x, params))
    np.testing.assert_allclose(np.asarray(out), np.asarray(ref),
                               rtol=1e-4, atol=1e-4)

    print("KERNEL_OK")
</pallas_src>

<mosaic_0001>
module attributes {stable_mosaic.version = 11 : i64} {
  func.func @kernel(%arg0: i32, %arg1: i32, %arg2: memref<2x4x256xf32, #tpu.memory_space<vmem>>, %arg3: memref<7x4xf32, #tpu.memory_space<vmem>>, %arg4: memref<7x1xf32, #tpu.memory_space<vmem>>, %arg5: memref<10x7xf32, #tpu.memory_space<vmem>>, %arg6: memref<10x1xf32, #tpu.memory_space<vmem>>, %arg7: memref<13x10xf32, #tpu.memory_space<vmem>>, %arg8: memref<13x1xf32, #tpu.memory_space<vmem>>, %arg9: memref<16x13xf32, #tpu.memory_space<vmem>>, %arg10: memref<16x1xf32, #tpu.memory_space<vmem>>, %arg11: memref<2x16x256xf32, #tpu.memory_space<vmem>>) attributes {dimension_semantics = [#tpu.dimension_semantics<parallel>, #tpu.dimension_semantics<parallel>], iteration_bounds = array<i64: 1, 1>, scalar_prefetch = 0 : i64, scratch_operands = 0 : i64, tpu.core_type = #tpu.core_type<tc>, window_params = [{transform_indices = @transform_0, window_bounds = array<i64: 2, 4, 256>}, {pipeline_mode = #tpu.pipeline_mode<synchronous>, transform_indices = @transform_1, window_bounds = array<i64: 7, 4>}, {pipeline_mode = #tpu.pipeline_mode<synchronous>, transform_indices = @transform_2, window_bounds = array<i64: 7, 1>}, {pipeline_mode = #tpu.pipeline_mode<synchronous>, transform_indices = @transform_3, window_bounds = array<i64: 10, 7>}, {pipeline_mode = #tpu.pipeline_mode<synchronous>, transform_indices = @transform_4, window_bounds = array<i64: 10, 1>}, {pipeline_mode = #tpu.pipeline_mode<synchronous>, transform_indices = @transform_5, window_bounds = array<i64: 13, 10>}, {pipeline_mode = #tpu.pipeline_mode<synchronous>, transform_indices = @transform_6, window_bounds = array<i64: 13, 1>}, {pipeline_mode = #tpu.pipeline_mode<synchronous>, transform_indices = @transform_7, window_bounds = array<i64: 16, 13>}, {pipeline_mode = #tpu.pipeline_mode<synchronous>, transform_indices = @transform_8, window_bounds = array<i64: 16, 1>}, {transform_indices = @transform_9, window_bounds = array<i64: 2, 16, 256>}]} {
    %c0 = arith.constant 0 : index
    %c0_0 = arith.constant 0 : index
    %0 = vector.load %arg3[%c0, %c0_0] : memref<7x4xf32, #tpu.memory_space<vmem>>, vector<7x4xf32>
    %c0_1 = arith.constant 0 : index
    %c0_2 = arith.constant 0 : index
    %1 = vector.load %arg5[%c0_1, %c0_2] : memref<10x7xf32, #tpu.memory_space<vmem>>, vector<10x7xf32>
    %c0_3 = arith.constant 0 : index
    %c0_4 = arith.constant 0 : index
    %2 = vector.load %arg7[%c0_3, %c0_4] : memref<13x10xf32, #tpu.memory_space<vmem>>, vector<13x10xf32>
    %c0_5 = arith.constant 0 : index
    %c0_6 = arith.constant 0 : index
    %3 = vector.load %arg9[%c0_5, %c0_6] : memref<16x13xf32, #tpu.memory_space<vmem>>, vector<16x13xf32>
    %c0_7 = arith.constant 0 : index
    %c0_8 = arith.constant 0 : index
    %4 = vector.load %arg4[%c0_7, %c0_8] : memref<7x1xf32, #tpu.memory_space<vmem>>, vector<7x1xf32>
    %c0_9 = arith.constant 0 : index
    %c0_10 = arith.constant 0 : index
    %5 = vector.load %arg6[%c0_9, %c0_10] : memref<10x1xf32, #tpu.memory_space<vmem>>, vector<10x1xf32>
    %c0_11 = arith.constant 0 : index
    %c0_12 = arith.constant 0 : index
    %6 = vector.load %arg8[%c0_11, %c0_12] : memref<13x1xf32, #tpu.memory_space<vmem>>, vector<13x1xf32>
    %c0_13 = arith.constant 0 : index
    %c0_14 = arith.constant 0 : index
    %7 = vector.load %arg10[%c0_13, %c0_14] : memref<16x1xf32, #tpu.memory_space<vmem>>, vector<16x1xf32>
    %c0_15 = arith.constant 0 : index
    %c0_16 = arith.constant 0 : index
    %c0_17 = arith.constant 0 : index
    %8 = vector.load %arg2[%c0_15, %c0_16, %c0_17] : memref<2x4x256xf32, #tpu.memory_space<vmem>>, vector<1x4x256xf32>
    %9 = vector.shape_cast %8 : vector<1x4x256xf32> to vector<4x256xf32>
    %cst = arith.constant dense<0.000000e+00> : vector<7x256xf32>
    %10 = tpu.matmul %0, %9, %cst {dimension_numbers = #tpu.dot_dimension_numbers<[1], [0], [0], [1], [0, 0, 1, 1], [], []>} : vector<7x4xf32>, vector<4x256xf32>, vector<7x256xf32> -> vector<7x256xf32>
    %11 = vector.broadcast %4 : vector<7x1xf32> to vector<7x256xf32>
    %12 = arith.addf %10, %11 : vector<7x256xf32>
    %cst_18 = arith.constant 0.000000e+00 : f32
    %13 = vector.broadcast %cst_18 : f32 to vector<7x256xf32>
    %14 = arith.maximumf %12, %13 : vector<7x256xf32>
    %cst_19 = arith.constant dense<0.000000e+00> : vector<10x256xf32>
    %15 = tpu.matmul %1, %14, %cst_19 {dimension_numbers = #tpu.dot_dimension_numbers<[1], [0], [0], [1], [0, 0, 1, 1], [], []>} : vector<10x7xf32>, vector<7x256xf32>, vector<10x256xf32> -> vector<10x256xf32>
    %16 = vector.broadcast %5 : vector<10x1xf32> to vector<10x256xf32>
    %17 = arith.addf %15, %16 : vector<10x256xf32>
    %cst_20 = arith.constant 0.000000e+00 : f32
    %18 = vector.broadcast %cst_20 : f32 to vector<10x256xf32>
    %19 = arith.maximumf %17, %18 : vector<10x256xf32>
    %cst_21 = arith.constant dense<0.000000e+00> : vector<13x256xf32>
    %20 = tpu.matmul %2, %19, %cst_21 {dimension_numbers = #tpu.dot_dimension_numbers<[1], [0], [0], [1], [0, 0, 1, 1], [], []>} : vector<13x10xf32>, vector<10x256xf32>, vector<13x256xf32> -> vector<13x256xf32>
    %21 = vector.broadcast %6 : vector<13x1xf32> to vector<13x256xf32>
    %22 = arith.addf %20, %21 : vector<13x256xf32>
    %cst_22 = arith.constant 0.000000e+00 : f32
    %23 = vector.broadcast %cst_22 : f32 to vector<13x256xf32>
    %24 = arith.maximumf %22, %23 : vector<13x256xf32>
    %cst_23 = arith.constant dense<0.000000e+00> : vector<16x256xf32>
    %25 = tpu.matmul %3, %24, %cst_23 {dimension_numbers = #tpu.dot_dimension_numbers<[1], [0], [0], [1], [0, 0, 1, 1], [], []>} : vector<16x13xf32>, vector<13x256xf32>, vector<16x256xf32> -> vector<16x256xf32>
    %26 = vector.broadcast %7 : vector<16x1xf32> to vector<16x256xf32>
    %27 = arith.addf %25, %26 : vector<16x256xf32>
    %c0_24 = arith.constant 0 : index
    %c0_25 = arith.constant 0 : index
    %c0_26 = arith.constant 0 : index
    %28 = vector.load %arg11[%c0_24, %c0_25, %c0_26] : memref<2x16x256xf32, #tpu.memory_space<vmem>>, vector<1x16x256xf32>
    %29 = vector.shape_cast %28 : vector<1x16x256xf32> to vector<16x256xf32>
    %30 = vector.shape_cast %27 : vector<16x256xf32> to vector<1x16x256xf32>
    tpu.vector_store %arg11[%c0_24, %c0_25, %c0_26], %30 {strides = array<i32>} : memref<2x16x256xf32, #tpu.memory_space<vmem>>, vector<1x16x256xf32>,
    %c1 = arith.constant 1 : index
    %c0_27 = arith.constant 0 : index
    %c0_28 = arith.constant 0 : index
    %31 = vector.load %arg2[%c1, %c0_27, %c0_28] : memref<2x4x256xf32, #tpu.memory_space<vmem>>, vector<1x4x256xf32>
    %32 = vector.shape_cast %31 : vector<1x4x256xf32> to vector<4x256xf32>
    %cst_29 = arith.constant dense<0.000000e+00> : vector<7x256xf32>
    %33 = tpu.matmul %0, %32, %cst_29 {dimension_numbers = #tpu.dot_dimension_numbers<[1], [0], [0], [1], [0, 0, 1, 1], [], []>} : vector<7x4xf32>, vector<4x256xf32>, vector<7x256xf32> -> vector<7x256xf32>
    %34 = vector.broadcast %4 : vector<7x1xf32> to vector<7x256xf32>
    %35 = arith.addf %33, %34 : vector<7x256xf32>
    %cst_30 = arith.constant 0.000000e+00 : f32
    %36 = vector.broadcast %cst_30 : f32 to vector<7x256xf32>
    %37 = arith.maximumf %35, %36 : vector<7x256xf32>
    %cst_31 = arith.constant dense<0.000000e+00> : vector<10x256xf32>
    %38 = tpu.matmul %1, %37, %cst_31 {dimension_numbers = #tpu.dot_dimension_numbers<[1], [0], [0], [1], [0, 0, 1, 1], [], []>} : vector<10x7xf32>, vector<7x256xf32>, vector<10x256xf32> -> vector<10x256xf32>
    %39 = vector.broadcast %5 : vector<10x1xf32> to vector<10x256xf32>
    %40 = arith.addf %38, %39 : vector<10x256xf32>
    %cst_32 = arith.constant 0.000000e+00 : f32
    %41 = vector.broadcast %cst_32 : f32 to vector<10x256xf32>
    %42 = arith.maximumf %40, %41 : vector<10x256xf32>
    %cst_33 = arith.constant dense<0.000000e+00> : vector<13x256xf32>
    %43 = tpu.matmul %2, %42, %cst_33 {dimension_numbers = #tpu.dot_dimension_numbers<[1], [0], [0], [1], [0, 0, 1, 1], [], []>} : vector<13x10xf32>, vector<10x256xf32>, vector<13x256xf32> -> vector<13x256xf32>
    %44 = vector.broadcast %6 : vector<13x1xf32> to vector<13x256xf32>
    %45 = arith.addf %43, %44 : vector<13x256xf32>
    %cst_34 = arith.constant 0.000000e+00 : f32
    %46 = vector.broadcast %cst_34 : f32 to vector<13x256xf32>
    %47 = arith.maximumf %45, %46 : vector<13x256xf32>
    %cst_35 = arith.constant dense<0.000000e+00> : vector<16x256xf32>
    %48 = tpu.matmul %3, %47, %cst_35 {dimension_numbers = #tpu.dot_dimension_numbers<[1], [0], [0], [1], [0, 0, 1, 1], [], []>} : vector<16x13xf32>, vector<13x256xf32>, vector<16x256xf32> -> vector<16x256xf32>
    %49 = vector.broadcast %7 : vector<16x1xf32> to vector<16x256xf32>
    %50 = arith.addf %48, %49 : vector<16x256xf32>
    %c1_36 = arith.constant 1 : index
    %c0_37 = arith.constant 0 : index
    %c0_38 = arith.constant 0 : index
    %51 = vector.load %arg11[%c1_36, %c0_37, %c0_38] : memref<2x16x256xf32, #tpu.memory_space<vmem>>, vector<1x16x256xf32>
    %52 = vector.shape_cast %51 : vector<1x16x256xf32> to vector<16x256xf32>
    %53 = vector.shape_cast %50 : vector<16x256xf32> to vector<1x16x256xf32>
    tpu.vector_store %arg11[%c1_36, %c0_37, %c0_38], %53 {strides = array<i32>} : memref<2x16x256xf32, #tpu.memory_space<vmem>>, vector<1x16x256xf32>,
    return
  }
  func.func @transform_0(%arg0: i32, %arg1: i32) -> (i32, i32, i32) {
    %c0_i32 = arith.constant 0 : i32
    %c0_i32_0 = arith.constant 0 : i32
    return %arg0, %c0_i32, %arg1 : i32, i32, i32
  }
  func.func @transform_1(%arg0: i32, %arg1: i32) -> (i32, i32) {
    %c0_i32 = arith.constant 0 : i32
    %c0_i32_0 = arith.constant 0 : i32
    %c0_i32_1 = arith.constant 0 : i32
    return %c0_i32, %c0_i32_0 : i32, i32
  }
  func.func @transform_2(%arg0: i32, %arg1: i32) -> (i32, i32) {
    %c0_i32 = arith.constant 0 : i32
    %c0_i32_0 = arith.constant 0 : i32
    %c0_i32_1 = arith.constant 0 : i32
    return %c0_i32, %c0_i32_0 : i32, i32
  }
  func.func @transform_3(%arg0: i32, %arg1: i32) -> (i32, i32) {
    %c0_i32 = arith.constant 0 : i32
    %c0_i32_0 = arith.constant 0 : i32
    %c0_i32_1 = arith.constant 0 : i32
    return %c0_i32, %c0_i32_0 : i32, i32
  }
  func.func @transform_4(%arg0: i32, %arg1: i32) -> (i32, i32) {
    %c0_i32 = arith.constant 0 : i32
    %c0_i32_0 = arith.constant 0 : i32
    %c0_i32_1 = arith.constant 0 : i32
    return %c0_i32, %c0_i32_0 : i32, i32
  }
  func.func @transform_5(%arg0: i32, %arg1: i32) -> (i32, i32) {
    %c0_i32 = arith.constant 0 : i32
    %c0_i32_0 = arith.constant 0 : i32
    %c0_i32_1 = arith.constant 0 : i32
    return %c0_i32, %c0_i32_0 : i32, i32
  }
  func.func @transform_6(%arg0: i32, %arg1: i32) -> (i32, i32) {
    %c0_i32 = arith.constant 0 : i32
    %c0_i32_0 = arith.constant 0 : i32
    %c0_i32_1 = arith.constant 0 : i32
    return %c0_i32, %c0_i32_0 : i32, i32
  }
  func.func @transform_7(%arg0: i32, %arg1: i32) -> (i32, i32) {
    %c0_i32 = arith.constant 0 : i32
    %c0_i32_0 = arith.constant 0 : i32
    %c0_i32_1 = arith.constant 0 : i32
    return %c0_i32, %c0_i32_0 : i32, i32
  }
  func.func @transform_8(%arg0: i32, %arg1: i32) -> (i32, i32) {
    %c0_i32 = arith.constant 0 : i32
    %c0_i32_0 = arith.constant 0 : i32
    %c0_i32_1 = arith.constant 0 : i32
    return %c0_i32, %c0_i32_0 : i32, i32
  }
  func.func @transform_9(%arg0: i32, %arg1: i32) -> (i32, i32, i32) {
    %c0_i32 = arith.constant 0 : i32
    %c0_i32_0 = arith.constant 0 : i32
    return %arg0, %c0_i32, %arg1 : i32, i32, i32
  }
}

</mosaic_0001>

<bundles_post_ra>
// kernel: tpu_custom_call.1
= control target key start
LH: loop header
LB: loop body
LE: loop exit
PB: predicated region body
PF: predicated region fallthrough
CT: control target
= control target key end

     0   :  { %v651_v2 = vmov 0   ;;  %s868_s0 = inlined_call_operand.vmem [shape: f32[2,4,256], index: 0, kind: input, shape index: {}]   ;;  %s869_s1 = inlined_call_operand.vmem [shape: f32[7,4], index: 1, kind: input, shape index: {}]   ;;  %s870_s2 = inlined_call_operand.vmem [shape: f32[7,1], index: 2, kind: input, shape index: {}]   ;;  %s871_s3 = inlined_call_operand.vmem [shape: f32[10,7], index: 3, kind: input, shape index: {}]   ;;  %s872_s4 = inlined_call_operand.vmem [shape: f32[10,1], index: 4, kind: input, shape index: {}]   ;;  %s873_s5 = inlined_call_operand.vmem [shape: f32[13,10], index: 5, kind: input, shape index: {}]   ;;  %s874_s6 = inlined_call_operand.vmem [shape: f32[13,1], index: 6, kind: input, shape index: {}]   ;;  %s875_s7 = inlined_call_operand.vmem [shape: f32[16,13], index: 7, kind: input, shape index: {}]   ;;  %s876_s8 = inlined_call_operand.vmem [shape: f32[16,1], index: 8, kind: input, shape index: {}]   ;;  %s877_s9 = inlined_call_operand.hbm [shape: f32[2,16,256], index: 9, kind: output, shape index: {}]  }
   0x1   :  { %v40_v0 = vld [vmem:[%s870_s2] sm:$0x7f]  ;;  %622 = vset.pattern.permute.xlu0 %v651_v2  ;;  %623 = vset.pattern.permute.xlu1 %v651_v2 }
   0x2   :  { %v47_v1 = vld [vmem:[%s868_s0] sm:$0xff]  ;;  %50 = vperm.xlu0 %622, %v40_v0   ;;  %624 = vset.pattern.permute.xlu2 %v651_v2 }
   0x3   :  { %54 = vst [vmem:[#allocation1] ss:$2 sm:$0xff] %v47_v1 }
   0x4   :  { %14 = vsyncpa [#allocation3], 0  ;;  %vm61_vm0 = vcmask 1043456   ;;  %v591_v3 = vld [vmem:[%s868_s0 + $0x8] sm:$0xff]  ;;  %v717_v4 = vld [vmem:[%s869_s1] sm:$0x7f] }
   0x5   :  { %vm57_vm1 = vcmask 31744   ;;  %v42_v5 = vld [vmem:[%s872_s4 + $0x8] sm:$0x3]  ;;  %v41_v9 = vld [vmem:[%s872_s4] sm:$0xff]  ;;  %vm125_vm2 = vcmask 1046528   ;;  %vm118_vm3 = vcmask 56320  }
   0x6   :  { %v46_v8 = vld [vmem:[%s876_s8 + $0x8] sm:$0xff]  ;;  %110 = vperm.xlu1 %623, %v41_v9   ;;  %v744_v18 = vld [vmem:[%s871_s3] sm:$0xff]  ;;  %vm199_vm4 = vcmask 1041408   ;;  %vm192_vm5 = vcmask 80896   ;;  %vm273_vm6 = vcmask 1044480   ;;  %vm266_vm7 = vcmask 105472  }
   0x7   :  { %v44_v10 = vld [vmem:[%s874_s6 + $0x8] sm:$0x1f]  ;;  %v43_v20 = vld [vmem:[%s874_s6] sm:$0xff]  ;;  %s557_s15 = sshll.u32 %s877_s9, 4  ;;  %s653_s16 = smov 256   ;;  %s558_s15 = int_to_ptr.hbm [resolvable:$true] %s557_s15 }
   0x8   :  { %v755_v19 = vld [vmem:[%s871_s3 + $0x8] sm:$0x3]  ;;  %184 = vperm.xlu2 %624, %v43_v20   ;;  %v779_v35 = vld [vmem:[%s873_s5] sm:$0xff]  ;;  %s654_s2 = smov 16  }
   0x9   :  { %v784_v36 = vld [vmem:[%s873_s5 + $0x8] sm:$0x1f]  ;;  %v45_v39 = vld [vmem:[%s876_s8] sm:$0xff] }
   0xa   :  { %v55_v6 = vld.sshfl [vmem:[#allocation1] sm:$0xff pattern:$0x75316420]  ;;  %v56_v7 = vld.sshfl [vmem:[#allocation1 + $0x8] sm:$0xff pattern:$0x75316420]  ;;  %115 = vperm.xlu0 %622, %v42_v5  }
   0xb   :  { %569 = vmatpush.msk.msra.mxu0 %vm61_vm0, %v55_v6  ;;  %571 = vmatpush.msk.msra.mxu1 %vm61_vm0, %v56_v7  ;;  %333 = vst [vmem:[#allocation1] ss:$2 sm:$0xff] %v591_v3  ;;  %v818_v60 = vld [vmem:[%s875_s7] sm:$0xff]  ;;  %v39_v61 = vld [vmem:[%s875_s7 + $0x8] sm:$0xff]  ;;  %s652_s7 = smov [#allocation2]  }
   0xc   :  { %570 = vmatmul.msk.f32.vlgmr.msra.gmra.mxu0 %vm57_vm1, %v717_v4  ;;  %572 = vmatmul.msk.f32.vlgmr.msra.gmra.mxu1 %vm57_vm1, %v717_v4  ;;  %s555_s12 = sshll.u32 %s652_s7, 4  ;;  %s556_s12 = int_to_ptr.vmem [resolvable:$true] %s555_s12 }
   0xe   :  { %189 = vperm.xlu1 %623, %v44_v10  }
  0x10   :  { %258 = vperm.xlu2 %624, %v45_v39  }
  0x12   :  { %263 = vperm.xlu0 %622, %v46_v8   ;;  %v334_v37 = vld.sshfl [vmem:[#allocation1] sm:$0xff pattern:$0x75316420]  ;;  %v335_v38 = vld.sshfl [vmem:[#allocation1 + $0x8] sm:$0xff pattern:$0x75316420] }
  0x62   :  { %v803_v42 = vpop.permute.xlu2 %184 }
  0x6a   :  { %v259_v0 = vpop.permute.xlu2 %258 }
  0x74   :  { %v737_v11 = vpop.permute.xlu0 %50 }
  0x78   :  { %v764_v23 = vpop.permute.xlu1 %110 }
  0x7c   :  { %v766_v24 = vpop.permute.xlu0 %115 }
  0x80   :  { %v805_v43 = vpop.permute.xlu1 %189 }
  0x89   :  { %v83_v12 = vpop.f32.mrf.mxu0  ;;  %v103_v13 = vpop.f32.mrf.mxu1 }
  0x8a   :  { %v84_v14 = vadd.f32 %v83_v12, %v737_v11  ;;  %v104_v15 = vadd.f32 %v103_v13, %v737_v11  ;;  %v264_v13 = vpop.permute.xlu0 %263 }
  0x8c   :  { %v106_v16 = vmax.f32 %v84_v14, 0.0  ;;  %v107_v17 = vmax.f32 %v104_v15, 0.0 }
  0x8e   :  { %573 = vmatpush.msk.msra.mxu2 %vm125_vm2, %v106_v16  ;;  %576 = vmatpush.msk.msra.mxu3 %vm125_vm2, %v107_v17 }
  0x8f   :  { %574 = vmatmul.msk.f32.vlgmr.msra.gmra.mxu2 %vm118_vm3, %v744_v18  ;;  %577 = vmatmul.msk.f32.vlgmr.msra.gmra.mxu3 %vm118_vm3, %v744_v18 }
  0x97   :  { %575 = vmatmul.msk.f32.gmra.mxu2 %vm118_vm3, %v755_v19  ;;  %578 = vmatmul.msk.f32.gmra.mxu3 %vm118_vm3, %v755_v19 }
 0x112   :  { %v149_v21 = vpop.f32.mrf.mxu2  ;;  %v172_v22 = vpop.f32.mrf.mxu3 }
 0x113   :  { %v150_v27 = vadd.f32 %v149_v21, %v764_v23  ;;  %v173_v30 = vadd.f32 %v172_v22, %v764_v23 }
 0x115   :  { %v178_v33 = vmax.f32 %v150_v27, 0.0  ;;  %v179_v34 = vmax.f32 %v173_v30, 0.0 }
 0x11a   :  { %v152_v25 = vpop.f32.mrf.mxu2  ;;  %v175_v26 = vpop.f32.mrf.mxu3 }
 0x11b   :  { %v153_v28 = vadd.f32 %v152_v25, %v766_v24  ;;  %v176_v29 = vadd.f32 %v175_v26, %v766_v24 }
 0x11d   :  { %v180_v31 = vmax.f32 %v153_v28, 0.0  ;;  %v181_v32 = vmax.f32 %v176_v29, 0.0 }
 0x11f   :  { %579 = vmatpush.msk.msrb.mxu0 %vm199_vm4, %v180_v31  ;;  %614 = vmatpush.msk.msrb.mxu2 %vm199_vm4, %v180_v31 }
 0x120   :  { %582 = vmatpush.msk.msrb.mxu1 %vm199_vm4, %v181_v32  ;;  %616 = vmatpush.msk.msrb.mxu3 %vm199_vm4, %v181_v32 }
 0x121   :  { %221 = vmatpush.msrb.mxu0 %v178_v33  ;;  %615 = vmatpush.msrb.mxu2 %v178_v33 }
 0x122   :  { %244 = vmatpush.msrb.mxu1 %v179_v34  ;;  %617 = vmatpush.msrb.mxu3 %v179_v34 }
 0x123   :  { %580 = vmatmul.msk.f32.vlgmr.msrb.gmra.mxu0 %vm192_vm5, %v779_v35  ;;  %581 = vmatmul.msk.f32.vlgmr.msrb.gmra.mxu2 %vm192_vm5, %v784_v36 }
 0x124   :  { %583 = vmatmul.msk.f32.vlgmr.msrb.gmra.mxu1 %vm192_vm5, %v779_v35  ;;  %584 = vmatmul.msk.f32.vlgmr.msrb.gmra.mxu3 %vm192_vm5, %v784_v36 }
 0x125   :  { %592 = vmatpush.msk.msra.mxu0 %vm61_vm0, %v334_v37  ;;  %594 = vmatpush.msk.msra.mxu1 %vm61_vm0, %v335_v38 }
 0x12b   :  { %593 = vmatmul.msk.f32.vlgmr.msra.gmra.mxu0 %vm57_vm1, %v717_v4 }
 0x12c   :  { %595 = vmatmul.msk.f32.vlgmr.msra.gmra.mxu1 %vm57_vm1, %v717_v4 }
 0x1a0   :  { %v223_v40 = vpop.f32.mrf.mxu0 }
 0x1a1   :  { %v246_v41 = vpop.f32.mrf.mxu1  ;;  %v224_v45 = vadd.f32 %v223_v40, %v803_v42 }
 0x1a2   :  { %v247_v48 = vadd.f32 %v246_v41, %v803_v42 }
 0x1a3   :  { %v252_v56 = vmax.f32 %v224_v45, 0.0 }
 0x1a4   :  { %v253_v58 = vmax.f32 %v247_v48, 0.0 }
 0x1a6   :  { %v226_v44 = vpop.f32.mrf.mxu2 }
 0x1a7   :  { %v227_v46 = vadd.f32 %v226_v44, %v805_v43  ;;  %v249_v47 = vpop.f32.mrf.mxu3 }
 0x1a8   :  { %v250_v49 = vadd.f32 %v249_v47, %v805_v43  ;;  %v357_v50 = vpop.f32.mrf.mxu0 }
 0x1a9   :  { %v254_v51 = vmax.f32 %v227_v46, 0.0  ;;  %v358_v52 = vadd.f32 %v357_v50, %v737_v11  ;;  %v377_v53 = vpop.f32.mrf.mxu1 }
 0x1aa   :  { %v255_v54 = vmax.f32 %v250_v49, 0.0  ;;  %v378_v55 = vadd.f32 %v377_v53, %v737_v11 }
 0x1ab   :  { %v380_v57 = vmax.f32 %v358_v52, 0.0  ;;  %585 = vmatpush.msk.msra.mxu2 %vm273_vm6, %v254_v51 }
 0x1ac   :  { %v381_v59 = vmax.f32 %v378_v55, 0.0  ;;  %588 = vmatpush.msk.msra.mxu3 %vm273_vm6, %v255_v54 }
 0x1ad   :  { %295 = vmatpush.msra.mxu2 %v252_v56  ;;  %596 = vmatpush.msk.msrb.mxu0 %vm125_vm2, %v380_v57 }
 0x1ae   :  { %318 = vmatpush.msra.mxu3 %v253_v58  ;;  %599 = vmatpush.msk.msrb.mxu1 %vm125_vm2, %v381_v59 }
 0x1af   :  { %586 = vmatmul.msk.f32.vlgmr.msra.gmra.mxu2 %vm266_vm7, %v818_v60  ;;  %589 = vmatmul.msk.f32.vlgmr.msra.gmra.mxu3 %vm266_vm7, %v818_v60 }
 0x1b0   :  { %597 = vmatmul.msk.f32.vlgmr.msrb.gmra.mxu0 %vm118_vm3, %v744_v18  ;;  %600 = vmatmul.msk.f32.vlgmr.msrb.gmra.mxu1 %vm118_vm3, %v744_v18 }
 0x1b7   :  { %587 = vmatmul.msk.f32.gmra.mxu2 %vm266_vm7, %v39_v61  ;;  %590 = vmatmul.msk.f32.gmra.mxu3 %vm266_vm7, %v39_v61 }
 0x1b8   :  { %598 = vmatmul.msk.f32.gmra.mxu0 %vm118_vm3, %v755_v19  ;;  %601 = vmatmul.msk.f32.gmra.mxu1 %vm118_vm3, %v755_v19 }
 0x22d   :  { %v405_v62 = vpop.f32.mrf.mxu0  ;;  %v428_v63 = vpop.f32.mrf.mxu1 }
 0x22e   :  { %v406_v7 = vadd.f32 %v405_v62, %v764_v23  ;;  %v429_v8 = vadd.f32 %v428_v63, %v764_v23 }
 0x230   :  { %v434_v14 = vmax.f32 %v406_v7, 0.0  ;;  %v435_v15 = vmax.f32 %v429_v8, 0.0 }
 0x232   :  { %v297_v1 = vpop.f32.mrf.mxu2  ;;  %v320_v2 = vpop.f32.mrf.mxu3 }
 0x233   :  { %v298_v3 = vadd.f32 %v297_v1, %v259_v0  ;;  %v321_v4 = vadd.f32 %v320_v2, %v259_v0 }
 0x235   :  { %326 = vst [vmem:[#allocation2] sm:$0xff] %v298_v3  ;;  %v408_v5 = vpop.f32.mrf.mxu0  ;;  %v431_v6 = vpop.f32.mrf.mxu1 }
 0x236   :  { %327 = vst [vmem:[#allocation2 + $0x8] sm:$0xff] %v321_v4  ;;  %v409_v9 = vadd.f32 %v408_v5, %v766_v24  ;;  %v432_v10 = vadd.f32 %v431_v6, %v766_v24 }
 0x238   :  { %v436_v11 = vmax.f32 %v409_v9, 0.0  ;;  %v437_v12 = vmax.f32 %v432_v10, 0.0 }
 0x23a   :  { %602 = vmatpush.msk.msrb.mxu2 %vm199_vm4, %v436_v11  ;;  %605 = vmatpush.msk.msrb.mxu3 %vm199_vm4, %v437_v12  ;;  %v300_v16 = vpop.f32.mrf.mxu2  ;;  %v323_v17 = vpop.f32.mrf.mxu3 }
 0x23b   :  { %v301_v18 = vadd.f32 %v300_v16, %v264_v13  ;;  %v324_v19 = vadd.f32 %v323_v17, %v264_v13 }
 0x23c   :  { %459 = vmatpush.msrb.mxu2 %v434_v14  ;;  %482 = vmatpush.msrb.mxu3 %v435_v15 }
 0x23d   :  { %328 = vst [vmem:[#allocation2 + $0x10] sm:$0xff] %v301_v18  ;;  %603 = vmatmul.msk.f32.vlgmr.msrb.gmra.mxu2 %vm192_vm5, %v779_v35  ;;  %606 = vmatmul.msk.f32.vlgmr.msrb.gmra.mxu3 %vm192_vm5, %v779_v35 }
 0x23e   :  { %329 = vst [vmem:[#allocation2 + $0x18] sm:$0xff] %v324_v19 }
 0x245   :  { %604 = vmatmul.msk.f32.gmra.mxu2 %vm192_vm5, %v784_v36  ;;  %607 = vmatmul.msk.f32.gmra.mxu3 %vm192_vm5, %v784_v36 }
 0x2c0   :  { %v461_v20 = vpop.f32.mrf.mxu2  ;;  %v484_v21 = vpop.f32.mrf.mxu3 }
 0x2c1   :  { %v462_v24 = vadd.f32 %v461_v20, %v803_v42  ;;  %v485_v25 = vadd.f32 %v484_v21, %v803_v42 }
 0x2c3   :  { %v490_v30 = vmax.f32 %v462_v24, 0.0  ;;  %v491_v31 = vmax.f32 %v485_v25, 0.0 }
 0x2c8   :  { %v464_v22 = vpop.f32.mrf.mxu2  ;;  %v487_v23 = vpop.f32.mrf.mxu3 }
 0x2c9   :  { %v465_v26 = vadd.f32 %v464_v22, %v805_v43  ;;  %v488_v27 = vadd.f32 %v487_v23, %v805_v43 }
 0x2cb   :  { %v492_v28 = vmax.f32 %v465_v26, 0.0  ;;  %v493_v29 = vmax.f32 %v488_v27, 0.0 }
 0x2cd   :  { %608 = vmatpush.msk.msra.mxu0 %vm273_vm6, %v492_v28  ;;  %611 = vmatpush.msk.msra.mxu1 %vm273_vm6, %v493_v29 }
 0x2cf   :  { %515 = vmatpush.msra.mxu0 %v490_v30  ;;  %538 = vmatpush.msra.mxu1 %v491_v31 }
 0x2d0   :  { %609 = vmatmul.msk.f32.vlgmr.msra.gmra.mxu0 %vm266_vm7, %v818_v60  ;;  %612 = vmatmul.msk.f32.vlgmr.msra.gmra.mxu1 %vm266_vm7, %v818_v60 }
 0x2d8   :  { %610 = vmatmul.msk.f32.gmra.mxu0 %vm266_vm7, %v39_v61  ;;  %613 = vmatmul.msk.f32.gmra.mxu1 %vm266_vm7, %v39_v61 }
 0x34d   :  { %v517_v32 = vpop.f32.mrf.mxu0  ;;  %v540_v33 = vpop.f32.mrf.mxu1 }
 0x34e   :  { %v518_v34 = vadd.f32 %v517_v32, %v259_v0  ;;  %v541_v35 = vadd.f32 %v540_v33, %v259_v0 }
 0x350   :  { %547 = vst [vmem:[#allocation2 + $0x20] sm:$0xff] %v518_v34 }
 0x351   :  { %548 = vst [vmem:[#allocation2 + $0x28] sm:$0xff] %v541_v35 }
 0x355   :  { %v520_v36 = vpop.f32.mrf.mxu0  ;;  %v543_v37 = vpop.f32.mrf.mxu1 }
 0x356   :  { %v521_v38 = vadd.f32 %v520_v36, %v264_v13  ;;  %v544_v39 = vadd.f32 %v543_v37, %v264_v13 }
 0x358   :  { %549 = vst [vmem:[#allocation2 + $0x30] sm:$0xff] %v521_v38 }
 0x359   :  { %550 = vst [vmem:[#allocation2 + $0x38] sm:$0xff] %v544_v39 }
 0x35a   :  { %563 = dma.vmem_to_hbm [thread:$0]  %s556_s12, 1024, %s558_s15, [#allocation3], %s653_s16, %s653_s16, %s654_s2  }
 0x35b   :  { %649 = dma.done.wait [#allocation3], 1024  }
 0x35c   :  { %650 = vsyncadd [#allocation3], 4294966272 }
 0x35d   :  { %568 = vsyncpa [#allocation3], 1 }

</bundles_post_ra>
